<compile_context>
chip_gen: v6e
topology: v6e:2x2x1
jax: 0.10.0
libtpu: 0.0.40
codegen_flags: <defaults>
</compile_context>

<pallas_src>
import jax
import jax.numpy as jnp
from jax.experimental import pallas as pl
from jax.experimental.pallas import tpu as pltpu

_LANE = 128
_WIDE_LANES = (4096, 2048, 1024, 512, 256, 128)  # prefer wide lane-dense rows
_MAX_NATURAL_LANES = 8192                        # keep per-row bytes bounded
_TARGET_BLOCK_BYTES = 4 << 20                    # ~4 MiB / buffer; 4 bufs ~= 16 MiB
_MEGACORE_BYTES = 1 << 20                        # force >=2 blocks above this (v7x 2 TCs)
_VMEM_LIMIT_BYTES = 32 << 20                     # fits v7x (64 MiB phys) with headroom


# --------------------------------------------------------------------------
# Device path A: single HBM->HBM async DMA copy (no VMEM round trip, no grid).
# --------------------------------------------------------------------------
def _dma_copy_kernel(x_hbm_ref, o_hbm_ref):
    def body(sem):
        cp = pltpu.make_async_copy(x_hbm_ref, o_hbm_ref, sem)
        cp.start()
        cp.wait()

    pl.run_scoped(body, pltpu.SemaphoreType.DMA)


@jax.jit
def _pallas_identity_dma(x: jax.Array) -> jax.Array:
    return pl.pallas_call(
        _dma_copy_kernel,
        out_shape=jax.ShapeDtypeStruct(x.shape, x.dtype),
        in_specs=[pl.BlockSpec(memory_space=pl.ANY)],
        out_specs=pl.BlockSpec(memory_space=pl.ANY),
        cost_estimate=pl.CostEstimate(
            flops=0, transcendentals=0,
            bytes_accessed=2 * x.size * x.dtype.itemsize),
    )(x)


# --------------------------------------------------------------------------
# Device path B: tiled, lane-dense VMEM streaming copy (BlockSpec pipelining).
# --------------------------------------------------------------------------
def _copy_kernel(x_ref, o_ref):
    # Identity forward: pure element copy of the current lane-dense tile.
    o_ref[...] = x_ref[...]


def _pick_lanes(n: int):
    """Widest 128-multiple lane width that divides n, or None."""
    for lanes in _WIDE_LANES:
        if n % lanes == 0:
            return lanes
    return None


def _plan_tile_rows(rows: int, lanes: int, itemsize: int) -> int:
    """Dtype-aware block-row count targeting ~4 MiB per buffer."""
    # sublane packing: f32 -> 8 rows, bf16 -> 16, int8/fp8 -> 32
    sub = max(8, 32 // itemsize)
    row_bytes = lanes * itemsize
    tile_rows = max(sub, (_TARGET_BLOCK_BYTES // row_bytes) // sub * sub)
    total_bytes = rows * row_bytes
    if total_bytes > _MEGACORE_BYTES:
        # Ensure at least 2 grid blocks so v7x can shard across its 2 TCs and
        # the input/output DMAs stay pipelined against the copy.
        half = ((rows + 1) // 2 // sub) * sub
        if half >= sub:
            tile_rows = min(tile_rows, half)
    if tile_rows >= rows:
        tile_rows = rows  # single full-array block (always layout-legal)
    return tile_rows


def _pallas_identity_2d(x2d: jax.Array) -> jax.Array:
    rows, lanes = x2d.shape
    tile_rows = _plan_tile_rows(rows, lanes, x2d.dtype.itemsize)
    grid = (pl.cdiv(rows, tile_rows),)
    return pl.pallas_call(
        _copy_kernel,
        out_shape=jax.ShapeDtypeStruct((rows, lanes), x2d.dtype),
        grid_spec=pl.GridSpec(
            grid=grid,
            in_specs=[pl.BlockSpec((tile_rows, lanes), lambda i: (i, 0))],
            out_specs=pl.BlockSpec((tile_rows, lanes), lambda i: (i, 0)),
        ),
        compiler_params=pltpu.CompilerParams(
            dimension_semantics=("parallel",),
            vmem_limit_bytes=_VMEM_LIMIT_BYTES,
        ),
        cost_estimate=pl.CostEstimate(
            flops=0, transcendentals=0,
            bytes_accessed=2 * rows * lanes * x2d.dtype.itemsize),
    )(x2d)


@jax.jit
def _pallas_identity_tiled(x: jax.Array) -> jax.Array:
    # shape/dtype are static under tracing -> all planning is compile-time Python;
    # the reshapes below are metadata-only inside jit.
    n = x.size
    if n == 0:
        return x
    orig_shape = x.shape
    if x.ndim >= 2 and orig_shape[-1] % _LANE == 0 and orig_shape[-1] <= _MAX_NATURAL_LANES:
        lanes = orig_shape[-1]          # keep the natural lane-aligned trailing dim
    else:
        lanes = _pick_lanes(n)
        if lanes is None:
            # No 128-multiple factorization: skip the device copy instead of
            # padding + slicing (each would be a full extra HBM pass).
            return x
    rows = n // lanes
    x2d = jnp.reshape(x, (rows, lanes))
    out2d = _pallas_identity_2d(x2d)
    return jnp.reshape(out2d, orig_shape)


# --------------------------------------------------------------------------
# Public forward
# --------------------------------------------------------------------------
def mlp_forward(x: jax.Array, *, use_pallas: bool = False,
                method: str = "dma") -> jax.Array:
    """Identity forward pass of MLP.

    Default (use_pallas=False) is the production path: `return x`, zero HBM
    traffic — nothing a kernel does can beat it. use_pallas=True demonstrates
    the device data path:
      method="dma"   : single HBM->HBM async DMA copy (best pure-copy path,
                       especially on v5e),
      method="tiled" : lane-dense VMEM streaming copy with ~4 MiB blocks and
                       a "parallel" grid (>=2 blocks above 1 MiB for v7x).
    """
    if not use_pallas:
        return x
    if method == "dma":
        return _pallas_identity_dma(x)
    return _pallas_identity_tiled(x)


class MLPPallas:
    """Mirror of the PyTorch MLP: constructor args are accepted but unused
    (the reference nn.Module defines no layers); forward is identity."""

    def __init__(self, input_size: int, num_hidden_neurons: int, num_classes: int,
                 use_pallas: bool = False, method: str = "dma"):
        self.input_size = input_size
        self.num_hidden_neurons = num_hidden_neurons
        self.num_classes = num_classes
        self.use_pallas = use_pallas
        self.method = method

    def __call__(self, x: jax.Array) -> jax.Array:
        return mlp_forward(x, use_pallas=self.use_pallas, method=self.method)


if __name__ == "__main__":
    key = jax.random.PRNGKey(0)
    batch, input_size, num_hidden, num_classes = 2, 128, 64, 10

    x = jax.random.normal(key, (batch, input_size), dtype=jnp.float32)

    # Production path (default): zero-cost identity, no kernel, no HBM traffic.
    model = MLPPallas(input_size, num_hidden, num_classes)
    out_fast = model(x)
    assert out_fast.shape == x.shape and out_fast.dtype == x.dtype
    assert bool(jnp.array_equal(out_fast, x))

    # Device path A: single HBM->HBM DMA copy.
    out_dma = jax.block_until_ready(mlp_forward(x, use_pallas=True, method="dma"))
    assert out_dma.shape == x.shape and out_dma.dtype == x.dtype
    assert bool(jnp.array_equal(out_dma, x))

    # Device path B (small): single lane-dense block, natural 128-wide trailing dim.
    out_tiled = jax.block_until_ready(mlp_forward(x, use_pallas=True, method="tiled"))
    assert bool(jnp.array_equal(out_tiled, x))

    # Device path B (larger): >=2 "parallel" grid blocks (v7x megacore shardable).
    x_big = jax.random.normal(jax.random.PRNGKey(1), (1024, 512), dtype=jnp.float32)
    out_big = jax.block_until_ready(mlp_forward(x_big, use_pallas=True, method="tiled"))
    assert bool(jnp.array_equal(out_big, x_big))

    # Sub-32-bit dtype: dtype-aware sublane-packed tile rows (bf16 -> 16-row multiples).
    x_bf16 = jax.random.normal(jax.random.PRNGKey(2), (64, 256), dtype=jnp.float32
                               ).astype(jnp.bfloat16)
    out_bf16 = jax.block_until_ready(mlp_forward(x_bf16, use_pallas=True, method="tiled"))
    assert bool(jnp.array_equal(out_bf16, x_bf16))

    # Non-128-multiple element count: kernel path short-circuits (no pad/slice passes).
    x_odd = jax.random.normal(jax.random.PRNGKey(3), (2, 33), dtype=jnp.float32)
    out_odd = mlp_forward(x_odd, use_pallas=True, method="tiled")
    assert bool(jnp.array_equal(out_odd, x_odd))

    print("KERNEL_OK")
</pallas_src>

<mosaic_0001>
module attributes {stable_mosaic.version = 11 : i64} {
  func.func @_dma_copy_kernel(%arg0: memref<2x128xf32, #tpu.memory_space<any>>, %arg1: memref<2x128xf32, #tpu.memory_space<any>>) attributes {dimension_semantics = [], scalar_prefetch = 0 : i64, scratch_operands = 0 : i64, tpu.core_type = #tpu.core_type<tc>} {
    "tpu.region"() ({
      %0 = tpu.sem_alloc : memref<!tpu.dma_semaphore, #tpu.memory_space<semaphore_mem>>
      tpu.enqueue_dma source(%arg0 : memref<2x128xf32, #tpu.memory_space<any>>) target(%arg1 : memref<2x128xf32, #tpu.memory_space<any>>) target_semaphore(%0 : memref<!tpu.dma_semaphore, #tpu.memory_space<semaphore_mem>>)
      tpu.wait_dma2 semaphore(%0 : memref<!tpu.dma_semaphore, #tpu.memory_space<semaphore_mem>>) src(%arg0 : memref<2x128xf32, #tpu.memory_space<any>>) dst(%arg1 : memref<2x128xf32, #tpu.memory_space<any>>)
      tpu.yield
    }) : () -> ()
    return
  }
}

</mosaic_0001>

<bundles_post_ra>
// kernel: _pallas_identity_dma.1
= control target key start
LH: loop header
LB: loop body
LE: loop exit
PB: predicated region body
PF: predicated region fallthrough
CT: control target
= control target key end

     0   :  { %s21_s6 = smov [#allocation2]   ;;  %s22_s7 = smov 131072   ;;  %s40_s0 = inlined_call_operand.hbm [shape: f32[2,128], index: 0, kind: input, shape index: {}]   ;;  %s41_s1 = inlined_call_operand.hbm [shape: f32[2,128], index: 1, kind: output, shape index: {}]  }
   0x1   :  { %s23_s8 = smov 0  }
   0x2   :  { %12 = dma.general %s40_s0, 32, %s41_s1, %s21_s6, %s22_s7, [#allocation4], %s23_s8, 0  }
   0x3   :  { %19 = dma.done.wait [#allocation2], 32 }
   0x4   :  { %20 = vsyncadd [#allocation2], 4294967264 }

</bundles_post_ra>
